<compile_context>
chip_gen: v5e
topology: v5e:2x2
jax: 0.10.0
libtpu: 0.0.40
codegen_flags: <defaults>
</compile_context>

<pallas_src>
import jax
import jax.numpy as jnp
from jax.experimental import pallas as pl
from jax.experimental.pallas import tpu as pltpu

_LANE = 128
_SUBLANE = 8


def _round_up(x, m):
    return ((x + m - 1) // m) * m


def _vmem_budget_and_limit():
    """(tile-sizing budget, vmem_limit_bytes) per TPU generation."""
    kind = ""
    try:
        kind = jax.devices()[0].device_kind.lower()
    except Exception:  # pragma: no cover - defensive
        pass
    if "v5e" in kind or "v5 lite" in kind or "v5lite" in kind:
        # 128 MiB physical VMEM, 16 MiB default scoped limit -> raise it.
        return 48 << 20, 64 << 20
    if "v6" in kind:
        # 128 MiB physical VMEM -> big tiles are cheap.
        return 64 << 20, 80 << 20
    # v7x (64 MiB physical per TC) or unknown: stay conservative.
    return 36 << 20, 48 << 20


def _asvd_kernel(x_ref, bT_ref, aT_ref, bias_ref, o_ref):
    # x_ref:    (TM, in_p)
    # bT_ref:   (in_p, r_p)    == B^T, zero-padded   (VMEM-resident)
    # aT_ref:   (r_p, out_p)   == A^T, zero-padded   (VMEM-resident)
    # bias_ref: (1, out_p)                           (VMEM-resident)
    # o_ref:    (TM, out_p)
    h = jnp.dot(x_ref[...], bT_ref[...], preferred_element_type=jnp.float32)
    h = h.astype(aT_ref.dtype)  # keep the second matmul in the weights' dtype
    y = jnp.dot(h, aT_ref[...], preferred_element_type=jnp.float32)
    o_ref[...] = (y + bias_ref[...].astype(jnp.float32)).astype(o_ref.dtype)


def asvd_linear(x, B, A, bias=None):
    """ASVDLinear forward: (x @ B^T) @ A^T + bias.

    x: (batch, seq, in_features); B: (rank, in_features);
    A: (out_features, rank); bias: (out_features,) or None.
    """
    batch, seq, in_features = x.shape
    out_features, rank = A.shape
    M = batch * seq

    in_p = _round_up(in_features, _LANE)
    out_p = _round_up(out_features, _LANE)
    r_p = _round_up(rank, _LANE)

    x_dtype = x.dtype
    w_dtype = A.dtype
    x_bytes = jnp.dtype(x_dtype).itemsize
    w_bytes = jnp.dtype(w_dtype).itemsize

    # Pre-transposed, zero-padded weights (lane-dense MXU tiles; the zero rows /
    # cols contribute nothing to the result, padded output cols are sliced off).
    bT = jnp.zeros((in_p, r_p), w_dtype).at[:in_features, :rank].set(B.T)
    aT = jnp.zeros((r_p, out_p), w_dtype).at[:rank, :out_features].set(A.T)
    if bias is None:
        bias2d = jnp.zeros((1, out_p), jnp.float32)
    else:
        bias2d = jnp.zeros((1, out_p), bias.dtype).at[0, :out_features].set(bias)

    # --- pick TM from a per-generation VMEM budget -------------------------
    budget, vmem_limit = _vmem_budget_and_limit()
    weight_bytes = 2 * ((bT.size + aT.size) * w_bytes + bias2d.size * 4)
    # TODO(synk): if weight_bytes alone exceeds the budget (extremely wide
    # layers), add a K (in_features) reduction grid axis with an f32
    # accumulator + pl.when init/finalize instead of shrinking TM further.
    per_row = (2 * in_p + 2 * out_p) * x_bytes + (r_p + out_p) * 4  # dbl-buffered tiles + f32 temps
    tm = (budget - weight_bytes) // per_row
    tm = int(max(_SUBLANE, min(tm, 2048, _round_up(M, _SUBLANE))))
    tm = max(_SUBLANE, (tm // _SUBLANE) * _SUBLANE)

    grid_m = pl.cdiv(M, tm)
    tm = _round_up(-(-M // grid_m), _SUBLANE)  # balance tiles across the grid
    m_pad = grid_m * tm

    x2d = jnp.zeros((m_pad, in_p), x_dtype).at[:M, :in_features].set(
        x.reshape(M, in_features)
    )

    cost = pl.CostEstimate(
        flops=2 * M * in_features * rank + 2 * M * rank * out_features,
        transcendentals=0,
        bytes_accessed=(
            x2d.size * x_bytes
            + (bT.size + aT.size) * w_bytes
            + bias2d.size * 4
            + m_pad * out_p * x_bytes
        ),
    )

    out2d = pl.pallas_call(
        _asvd_kernel,
        out_shape=jax.ShapeDtypeStruct((m_pad, out_p), x_dtype),
        grid_spec=pltpu.PrefetchScalarGridSpec(
            num_scalar_prefetch=0,
            grid=(grid_m,),
            in_specs=[
                pl.BlockSpec((tm, in_p), lambda i: (i, 0)),     # streamed
                pl.BlockSpec((in_p, r_p), lambda i: (0, 0)),    # VMEM-resident
                pl.BlockSpec((r_p, out_p), lambda i: (0, 0)),   # VMEM-resident
                pl.BlockSpec((1, out_p), lambda i: (0, 0)),     # VMEM-resident
            ],
            out_specs=pl.BlockSpec((tm, out_p), lambda i: (i, 0)),
        ),
        compiler_params=pltpu.CompilerParams(
            dimension_semantics=("parallel",),   # shards across v7x's 2 TCs
            vmem_limit_bytes=int(vmem_limit),
        ),
        cost_estimate=cost,
    )(x2d, bT, aT, bias2d)

    return out2d[:M, :out_features].reshape(batch, seq, out_features)


if __name__ == "__main__":
    # Small shapes consistent with the module's forward.
    batch, seq = 2, 8
    in_features, out_features, rank = 32, 32, 8

    key = jax.random.PRNGKey(0)
    kx, kb, ka, kbias = jax.random.split(key, 4)

    x = jax.random.normal(kx, (batch, seq, in_features), dtype=jnp.float32)
    # Deterministic parameter init (synthetic, not a checkpoint load).
    B = jax.random.normal(kb, (rank, in_features), dtype=jnp.float32) * 0.1
    A = jax.random.normal(ka, (out_features, rank), dtype=jnp.float32) * 0.1
    bias = jax.random.normal(kbias, (out_features,), dtype=jnp.float32) * 0.1

    out = asvd_linear(x, B, A, bias)
    out = jax.block_until_ready(out)

    # Pure-JAX reference check of the forward semantics.
    ref = (x @ B.T) @ A.T + bias
    assert out.shape == (batch, seq, out_features)
    assert jnp.allclose(out, ref, atol=1e-5, rtol=1e-5)

    print("KERNEL_OK")
</pallas_src>

<mosaic_0001>
module attributes {stable_mosaic.version = 11 : i64} {
  func.func @_asvd_kernel(%arg0: i32, %arg1: memref<16x128xf32, #tpu.memory_space<vmem>>, %arg2: memref<128x128xf32, #tpu.memory_space<vmem>>, %arg3: memref<128x128xf32, #tpu.memory_space<vmem>>, %arg4: memref<1x128xf32, #tpu.memory_space<vmem>>, %arg5: memref<16x128xf32, #tpu.memory_space<vmem>>) attributes {dimension_semantics = [#tpu.dimension_semantics<parallel>], iteration_bounds = array<i64: 1>, scalar_prefetch = 0 : i64, scratch_operands = 0 : i64, tpu.core_type = #tpu.core_type<tc>, window_params = [{transform_indices = @transform_0, window_bounds = array<i64: 16, 128>}, {pipeline_mode = #tpu.pipeline_mode<synchronous>, transform_indices = @transform_1, window_bounds = array<i64: 128, 128>}, {pipeline_mode = #tpu.pipeline_mode<synchronous>, transform_indices = @transform_2, window_bounds = array<i64: 128, 128>}, {pipeline_mode = #tpu.pipeline_mode<synchronous>, transform_indices = @transform_3, window_bounds = array<i64: 1, 128>}, {transform_indices = @transform_4, window_bounds = array<i64: 16, 128>}]} {
    %c0 = arith.constant 0 : index
    %c0_0 = arith.constant 0 : index
    %0 = vector.load %arg1[%c0, %c0_0] : memref<16x128xf32, #tpu.memory_space<vmem>>, vector<16x128xf32>
    %c0_1 = arith.constant 0 : index
    %c0_2 = arith.constant 0 : index
    %1 = vector.load %arg2[%c0_1, %c0_2] : memref<128x128xf32, #tpu.memory_space<vmem>>, vector<128x128xf32>
    %cst = arith.constant dense<0.000000e+00> : vector<16x128xf32>
    %2 = tpu.matmul %0, %1, %cst {dimension_numbers = #tpu.dot_dimension_numbers<[1], [0], [0], [1], [0, 0, 1, 1], [], []>} : vector<16x128xf32>, vector<128x128xf32>, vector<16x128xf32> -> vector<16x128xf32>
    %c0_3 = arith.constant 0 : index
    %c0_4 = arith.constant 0 : index
    %3 = vector.load %arg3[%c0_3, %c0_4] : memref<128x128xf32, #tpu.memory_space<vmem>>, vector<128x128xf32>
    %cst_5 = arith.constant dense<0.000000e+00> : vector<16x128xf32>
    %4 = tpu.matmul %2, %3, %cst_5 {dimension_numbers = #tpu.dot_dimension_numbers<[1], [0], [0], [1], [0, 0, 1, 1], [], []>} : vector<16x128xf32>, vector<128x128xf32>, vector<16x128xf32> -> vector<16x128xf32>
    %c0_6 = arith.constant 0 : index
    %c0_7 = arith.constant 0 : index
    %5 = vector.load %arg4[%c0_6, %c0_7] : memref<1x128xf32, #tpu.memory_space<vmem>>, vector<1x128xf32>
    %6 = vector.broadcast %5 : vector<1x128xf32> to vector<16x128xf32>
    %7 = arith.addf %4, %6 : vector<16x128xf32>
    %c0_8 = arith.constant 0 : index
    %c0_9 = arith.constant 0 : index
    %8 = vector.load %arg5[%c0_8, %c0_9] : memref<16x128xf32, #tpu.memory_space<vmem>>, vector<16x128xf32>
    tpu.vector_store %arg5[%c0_8, %c0_9], %7 {strides = array<i32>} : memref<16x128xf32, #tpu.memory_space<vmem>>, vector<16x128xf32>,
    return
  }
  func.func @transform_0(%arg0: i32) -> (i32, i32) {
    %c0_i32 = arith.constant 0 : i32
    %c0_i32_0 = arith.constant 0 : i32
    return %arg0, %c0_i32 : i32, i32
  }
  func.func @transform_1(%arg0: i32) -> (i32, i32) {
    %c0_i32 = arith.constant 0 : i32
    %c0_i32_0 = arith.constant 0 : i32
    %c0_i32_1 = arith.constant 0 : i32
    return %c0_i32, %c0_i32_0 : i32, i32
  }
  func.func @transform_2(%arg0: i32) -> (i32, i32) {
    %c0_i32 = arith.constant 0 : i32
    %c0_i32_0 = arith.constant 0 : i32
    %c0_i32_1 = arith.constant 0 : i32
    return %c0_i32, %c0_i32_0 : i32, i32
  }
  func.func @transform_3(%arg0: i32) -> (i32, i32) {
    %c0_i32 = arith.constant 0 : i32
    %c0_i32_0 = arith.constant 0 : i32
    %c0_i32_1 = arith.constant 0 : i32
    return %c0_i32, %c0_i32_0 : i32, i32
  }
  func.func @transform_4(%arg0: i32) -> (i32, i32) {
    %c0_i32 = arith.constant 0 : i32
    %c0_i32_0 = arith.constant 0 : i32
    return %arg0, %c0_i32 : i32, i32
  }
}

</mosaic_0001>

<bundles_post_ra>
// kernel: tpu_custom_call.1
= control target key start
LH: loop header
LB: loop body
LE: loop exit
PB: predicated region body
PF: predicated region fallthrough
CT: control target
= control target key end

     0   :  { %9 = vsyncpa [#allocation3], 0  ;;  %s370_s0 = inlined_call_operand.hbm [shape: f32[16,128], index: 0, kind: input, shape index: {}]   ;;  %s371_s1 = inlined_call_operand.hbm [shape: f32[128,128], index: 1, kind: input, shape index: {}]   ;;  %s372_s2 = inlined_call_operand.hbm [shape: f32[128,128], index: 2, kind: input, shape index: {}]   ;;  %s373_s3 = inlined_call_operand.vmem [shape: f32[1,128], index: 3, kind: input, shape index: {}]   ;;  %s374_s4 = inlined_call_operand.hbm [shape: f32[16,128], index: 4, kind: output, shape index: {}]  }
   0x1   :  { %10 = vsyncpa [#allocation6], 0 }
   0x2   :  { %11 = vsyncpa [#allocation4], 0  ;;  %s29_s17 = sshll.u32 %s371_s1, 4  ;;  %s312_s18 = smov [#allocation5]   ;;  %s30_s17 = int_to_ptr.hbm [resolvable:$true] %s29_s17 }
   0x3   :  { %s31_s19 = sshll.u32 %s312_s18, 4  ;;  %s16_s22 = sshll.u32 %s370_s0, 4  ;;  %s32_s19 = int_to_ptr.vmem [resolvable:$true] %s31_s19  ;;  %s17_s22 = int_to_ptr.hbm [resolvable:$true] %s16_s22 }
   0x4   :  { %s313_s23 = smov 128   ;;  %s314_s24 = smov 8  }
   0x5   :  { %37 = dma.hbm_to_vmem [thread:$0]  %s30_s17, 2048, %s32_s19, [#allocation6], %s313_s23, %s313_s23, %s314_s24  }
   0x6   :  { %s315_s25 = smov [#allocation2]   ;;  %s42_s1 = sshll.u32 %s372_s2, 4  ;;  %s43_s1 = int_to_ptr.hbm [resolvable:$true] %s42_s1 }
   0x7   :  { %s18_s26 = sshll.u32 %s315_s25, 4  ;;  %s316_s0 = smov [#allocation7]   ;;  %s19_s26 = int_to_ptr.vmem [resolvable:$true] %s18_s26 }
   0x8   :  { %24 = dma.hbm_to_vmem [thread:$0]  %s17_s22, 256, %s19_s26, [#allocation3], %s313_s23, %s313_s23, %s314_s24  }
   0x9   :  { %s44_s29 = sshll.u32 %s316_s0, 4  ;;  %s45_s29 = int_to_ptr.vmem [resolvable:$true] %s44_s29 }
   0xa   :  { %50 = dma.hbm_to_vmem [thread:$0]  %s43_s1, 2048, %s45_s29, [#allocation6], %s313_s23, %s313_s23, %s314_s24  }
   0xb   :  { %306 = dma.done.wait [#allocation3], 256  }
   0xc   :  { %307 = vsyncadd [#allocation3], 4294967040 }
   0xd   :  { %308 = dma.done.wait [#allocation6], 4096  }
   0xe   :  { %309 = vsyncadd [#allocation6], 4294963200  ;;  %v82_v0 = vld [vmem:[#allocation5 + $0x78] sm:$0xff]  ;;  %v81_v1 = vld [vmem:[#allocation5 + $0x70] sm:$0xff]  ;;  %s317_s5 = smov [#allocation8]   ;;  %s157_s9 = sshll.u32 %s374_s4, 4  ;;  %s158_s9 = int_to_ptr.hbm [resolvable:$true] %s157_s9 }
   0xf   :  { %171 = vmatpush.msra.mxu2 %v82_v0  ;;  %83 = vmatpush.msra.mxu0 %v82_v0  ;;  %v80_v2 = vld [vmem:[#allocation5 + $0x68] sm:$0xff]  ;;  %v79_v3 = vld [vmem:[#allocation5 + $0x60] sm:$0xff]  ;;  %v78_v4 = vld [vmem:[#allocation5 + $0x58] sm:$0xff]  ;;  %s155_s6 = sshll.u32 %s317_s5, 4  ;;  %s156_s6 = int_to_ptr.vmem [resolvable:$true] %s155_s6 }
  0x10   :  { %v121_v5 = vld [vmem:[#allocation7 + $0x78] sm:$0xff]  ;;  %v120_v6 = vld [vmem:[#allocation7 + $0x70] sm:$0xff]  ;;  %v119_v8 = vld [vmem:[#allocation7 + $0x68] sm:$0xff] }
  0x11   :  { %172 = vmatpush.msra.mxu2 %v81_v1  ;;  %84 = vmatpush.msra.mxu0 %v81_v1  ;;  %v77_v7 = vld [vmem:[#allocation5 + $0x50] sm:$0xff]  ;;  %v76_v9 = vld [vmem:[#allocation5 + $0x48] sm:$0xff]  ;;  %v118_v10 = vld [vmem:[#allocation7 + $0x60] sm:$0xff] }
  0x12   :  { %187 = vmatpush.msra.mxu3 %v121_v5  ;;  %126 = vmatpush.msra.mxu1 %v121_v5  ;;  %v75_v11 = vld [vmem:[#allocation5 + $0x40] sm:$0xff]  ;;  %v117_v12 = vld [vmem:[#allocation7 + $0x58] sm:$0xff]  ;;  %v116_v14 = vld [vmem:[#allocation7 + $0x50] sm:$0xff] }
  0x13   :  { %173 = vmatpush.msra.mxu2 %v80_v2  ;;  %85 = vmatpush.msra.mxu0 %v80_v2  ;;  %v74_v13 = vld [vmem:[#allocation5 + $0x38] sm:$0xff]  ;;  %v73_v15 = vld [vmem:[#allocation5 + $0x30] sm:$0xff]  ;;  %v115_v16 = vld [vmem:[#allocation7 + $0x48] sm:$0xff] }
  0x14   :  { %188 = vmatpush.msra.mxu3 %v120_v6  ;;  %127 = vmatpush.msra.mxu1 %v120_v6  ;;  %v72_v17 = vld [vmem:[#allocation5 + $0x28] sm:$0xff]  ;;  %v114_v18 = vld [vmem:[#allocation7 + $0x40] sm:$0xff]  ;;  %v113_v20 = vld [vmem:[#allocation7 + $0x38] sm:$0xff] }
  0x15   :  { %174 = vmatpush.msra.mxu2 %v79_v3  ;;  %86 = vmatpush.msra.mxu0 %v79_v3  ;;  %v71_v19 = vld [vmem:[#allocation5 + $0x20] sm:$0xff]  ;;  %v70_v21 = vld [vmem:[#allocation5 + $0x18] sm:$0xff]  ;;  %v112_v22 = vld [vmem:[#allocation7 + $0x30] sm:$0xff] }
  0x16   :  { %189 = vmatpush.msra.mxu3 %v119_v8  ;;  %128 = vmatpush.msra.mxu1 %v119_v8  ;;  %v69_v23 = vld [vmem:[#allocation5 + $0x10] sm:$0xff]  ;;  %v111_v24 = vld [vmem:[#allocation7 + $0x28] sm:$0xff]  ;;  %v110_v26 = vld [vmem:[#allocation7 + $0x20] sm:$0xff] }
  0x17   :  { %175 = vmatpush.msra.mxu2 %v78_v4  ;;  %87 = vmatpush.msra.mxu0 %v78_v4  ;;  %v68_v25 = vld [vmem:[#allocation5 + $0x8] sm:$0xff]  ;;  %v67_v27 = vld [vmem:[#allocation5] sm:$0xff]  ;;  %v66_v28 = vld [vmem:[#allocation2 + $0x8] sm:$0xff] }
  0x18   :  { %190 = vmatpush.msra.mxu3 %v118_v10  ;;  %129 = vmatpush.msra.mxu1 %v118_v10  ;;  %v65_v29 = vld [vmem:[#allocation2] sm:$0xff]  ;;  %v109_v30 = vld [vmem:[#allocation7 + $0x18] sm:$0xff]  ;;  %v107_v32 = vld [vmem:[#allocation7 + $0x8] sm:$0xff] }
  0x19   :  { %176 = vmatpush.msra.mxu2 %v77_v7  ;;  %88 = vmatpush.msra.mxu0 %v77_v7  ;;  %v108_v31 = vld [vmem:[#allocation7 + $0x10] sm:$0xff]  ;;  %v106_v33 = vld [vmem:[#allocation7] sm:$0xff] }
  0x1a   :  { %191 = vmatpush.msra.mxu3 %v117_v12  ;;  %130 = vmatpush.msra.mxu1 %v117_v12  ;;  %v209_v36 = vld [vmem:[%s373_s3] ss:$0 sm:$0xff] }
  0x1b   :  { %177 = vmatpush.msra.mxu2 %v76_v9  ;;  %89 = vmatpush.msra.mxu0 %v76_v9 }
  0x1c   :  { %192 = vmatpush.msra.mxu3 %v116_v14  ;;  %131 = vmatpush.msra.mxu1 %v116_v14 }
  0x1d   :  { %178 = vmatpush.msra.mxu2 %v75_v11  ;;  %90 = vmatpush.msra.mxu0 %v75_v11 }
  0x1e   :  { %193 = vmatpush.msra.mxu3 %v115_v16  ;;  %132 = vmatpush.msra.mxu1 %v115_v16 }
  0x1f   :  { %179 = vmatpush.msra.mxu2 %v74_v13  ;;  %91 = vmatpush.msra.mxu0 %v74_v13 }
  0x20   :  { %194 = vmatpush.msra.mxu3 %v114_v18  ;;  %133 = vmatpush.msra.mxu1 %v114_v18 }
  0x21   :  { %180 = vmatpush.msra.mxu2 %v73_v15  ;;  %92 = vmatpush.msra.mxu0 %v73_v15 }
  0x22   :  { %195 = vmatpush.msra.mxu3 %v113_v20  ;;  %134 = vmatpush.msra.mxu1 %v113_v20 }
  0x23   :  { %181 = vmatpush.msra.mxu2 %v72_v17  ;;  %93 = vmatpush.msra.mxu0 %v72_v17 }
  0x24   :  { %196 = vmatpush.msra.mxu3 %v112_v22  ;;  %135 = vmatpush.msra.mxu1 %v112_v22 }
  0x25   :  { %182 = vmatpush.msra.mxu2 %v71_v19  ;;  %94 = vmatpush.msra.mxu0 %v71_v19 }
  0x26   :  { %197 = vmatpush.msra.mxu3 %v111_v24  ;;  %136 = vmatpush.msra.mxu1 %v111_v24 }
  0x27   :  { %183 = vmatpush.msra.mxu2 %v70_v21  ;;  %95 = vmatpush.msra.mxu0 %v70_v21 }
  0x28   :  { %198 = vmatpush.msra.mxu3 %v110_v26  ;;  %137 = vmatpush.msra.mxu1 %v110_v26 }
  0x29   :  { %184 = vmatpush.msra.mxu2 %v69_v23  ;;  %96 = vmatpush.msra.mxu0 %v69_v23 }
  0x2a   :  { %199 = vmatpush.msra.mxu3 %v109_v30  ;;  %138 = vmatpush.msra.mxu1 %v109_v30 }
  0x2b   :  { %185 = vmatpush.msra.mxu2 %v68_v25  ;;  %97 = vmatpush.msra.mxu0 %v68_v25 }
  0x2c   :  { %200 = vmatpush.msra.mxu3 %v108_v31  ;;  %139 = vmatpush.msra.mxu1 %v108_v31 }
  0x2d   :  { %186 = vmatpush.msra.mxu2 %v67_v27  ;;  %98 = vmatpush.msra.mxu0 %v67_v27 }
  0x2e   :  { %102 = vmatmul.f32.vlgmr.msra.gmra.mxu2 %v66_v28  ;;  %99 = vmatmul.f32.vlgmr.msra.gmra.mxu0 %v65_v29 }
  0x2f   :  { %201 = vmatpush.msra.mxu3 %v107_v32  ;;  %140 = vmatpush.msra.mxu1 %v107_v32 }
  0x31   :  { %202 = vmatpush.msra.mxu3 %v106_v33  ;;  %141 = vmatpush.msra.mxu1 %v106_v33 }
  0xab   :  { %v100_v34 = vpop.f32.mrf.mxu0 }
  0xac   :  { %142 = vmatmul.f32.vlgmr.msra.gmra.mxu1 %v100_v34 }
  0xb1   :  { %v103_v35 = vpop.f32.mrf.mxu2 }
  0xb2   :  { %145 = vmatmul.f32.vlgmr.msra.gmra.mxu3 %v103_v35 }
 0x129   :  { %v143_v37 = vpop.f32.mrf.mxu1 }
 0x12a   :  { %v144_v38 = vadd.f32 %v209_v36, %v143_v37 }
 0x12c   :  { %149 = vst [vmem:[#allocation8] sm:$0xff] %v144_v38 }
 0x135   :  { %v146_v39 = vpop.f32.mrf.mxu3 }
 0x136   :  { %v147_v40 = vadd.f32 %v209_v36, %v146_v39 }
 0x138   :  { %150 = vst [vmem:[#allocation8 + $0x8] sm:$0xff] %v147_v40 }
 0x139   :  { %163 = dma.vmem_to_hbm [thread:$0]  %s156_s6, 256, %s158_s9, [#allocation4], %s313_s23, %s313_s23, %s314_s24  }
 0x13a   :  { %310 = dma.done.wait [#allocation4], 256  }
 0x13b   :  { %311 = vsyncadd [#allocation4], 4294967040 }
 0x13c   :  { %168 = vsyncpa [#allocation3], 1 }
 0x13d   :  { %169 = vsyncpa [#allocation6], 1 }
 0x13e   :  { %170 = vsyncpa [#allocation4], 1 }

</bundles_post_ra>
